<compile_context>
chip_gen: v5e
topology: v5e:2x2
jax: 0.10.0
libtpu: 0.0.40
codegen_flags: <defaults>
</compile_context>

<pallas_src>
import functools

import jax
import jax.numpy as jnp
import numpy as np
from jax.experimental import pallas as pl
from jax.experimental.pallas import tpu as pltpu

EPS = 1e-5  # PyTorch BatchNorm1d default eps


def _shift_masks(L, NL):
    """Masks (1, NL) zeroing the x[l-1] / x[l+1] taps at per-sample boundaries."""
    pos = jax.lax.broadcasted_iota(jnp.int32, (1, NL), 1)
    l_idx = pos % L
    mask_prev = (l_idx != 0).astype(jnp.float32)        # x[l-1] valid only for l >= 1
    mask_next = (l_idx != (L - 1)).astype(jnp.float32)  # x[l+1] valid only for l <= L-2
    return mask_prev, mask_next


def _conv1d_k3_im2col(x2d, w_flat, mask_prev, mask_next):
    """x2d: (Cin, NL) f32, w_flat: (Cout, 3*Cin) -> (Cout, NL) f32. One MXU matmul."""
    C, NL = x2d.shape
    zeros = jnp.zeros((C, 1), dtype=jnp.float32)
    xp = jnp.concatenate([zeros, x2d, zeros], axis=1)          # (C, NL+2), zero padding=1
    x_prev = xp[:, 0:NL] * mask_prev                           # tap k=0 -> x[l-1]
    x_next = xp[:, 2:NL + 2] * mask_next                       # tap k=2 -> x[l+1]
    xim = jnp.concatenate([x_prev, x2d, x_next], axis=0)       # (3*C, NL)
    return jnp.dot(w_flat, xim, preferred_element_type=jnp.float32)


def _bn_relu(h, gamma, beta, inv_count):
    """Training-mode BatchNorm1d (biased batch stats over the fused N*L axis) + ReLU."""
    s = jnp.sum(h, axis=1, keepdims=True)
    ss = jnp.sum(h * h, axis=1, keepdims=True)
    mean = s * inv_count
    var = ss * inv_count - mean * mean
    scale = gamma * jax.lax.rsqrt(var + EPS)                   # (C, 1)
    shift = beta - mean * scale                                # (C, 1)
    return jnp.maximum(h * scale + shift, 0.0)                 # one FMA + max per element


def double_conv_kernel(L, x_ref, w1_ref, w2_ref, pp_ref, o_ref):
    x = x_ref[...].astype(jnp.float32)                         # (Cin, N*L)
    NL = x.shape[1]
    inv_count = 1.0 / float(NL)
    mask_prev, mask_next = _shift_masks(L, NL)

    g1, be1, g2, be2 = pp_ref[0], pp_ref[1], pp_ref[2], pp_ref[3]   # each (Cout, 1)

    h = _conv1d_k3_im2col(x, w1_ref[...], mask_prev, mask_next)
    h = _bn_relu(h, g1, be1, inv_count)
    h = _conv1d_k3_im2col(h, w2_ref[...], mask_prev, mask_next)
    h = _bn_relu(h, g2, be2, inv_count)

    o_ref[...] = h.astype(o_ref.dtype)                         # lane-dense (Cout, N*L) store


def double_conv(x, p):
    """x: (N, Cin, L) f32; p: dict of PyTorch-layout params. Returns (N, Cout, L) f32."""
    N, Cin, L = x.shape
    Cout = p["w1"].shape[0]
    NL = N * L

    # Host-side layout plumbing (outside the kernel).
    x2d = jnp.transpose(x, (1, 0, 2)).reshape(Cin, NL)                       # (Cin, N*L)
    w1f = jnp.transpose(p["w1"], (0, 2, 1)).reshape(Cout, 3 * Cin)           # (Cout, 3*Cin)
    w2f = jnp.transpose(p["w2"], (0, 2, 1)).reshape(Cout, 3 * Cout)          # (Cout, 3*Cout)
    pp = jnp.stack([p["g1"], p["be1"], p["g2"], p["be2"]], axis=0)           # (4, Cout, 1)
    # NOTE: conv biases b1/b2 are intentionally NOT passed -- cancelled by train-mode BN.

    vmem = pl.BlockSpec(memory_space=pltpu.MemorySpace.VMEM)
    out2d = pl.pallas_call(
        functools.partial(double_conv_kernel, L),
        out_shape=jax.ShapeDtypeStruct((Cout, NL), jnp.float32),
        in_specs=[vmem] * 4,
        out_specs=vmem,
    )(x2d, w1f, w2f, pp)

    return jnp.transpose(out2d.reshape(Cout, N, L), (1, 0, 2))               # (N, Cout, L)


def ref_forward(x, p):
    """Pure-JAX reference mirroring the PyTorch module in train mode (keeps conv biases)."""
    def conv(x, w, b):
        y = jax.lax.conv_general_dilated(
            x, w, window_strides=(1,), padding=[(1, 1)],
            dimension_numbers=("NCH", "OIH", "NCH"),
            precision=jax.lax.Precision.HIGHEST)
        return y + b[None, :, :]

    def bnrelu(h, g, be):
        mean = h.mean(axis=(0, 2), keepdims=True)
        var = ((h - mean) ** 2).mean(axis=(0, 2), keepdims=True)
        return jnp.maximum(g[None, :, :] * (h - mean) / jnp.sqrt(var + EPS)
                           + be[None, :, :], 0.0)

    h = bnrelu(conv(x, p["w1"], p["b1"]), p["g1"], p["be1"])
    return bnrelu(conv(h, p["w2"], p["b2"]), p["g2"], p["be2"])


if __name__ == "__main__":
    N, Cin, Cout, L = 2, 4, 8, 16
    key = jax.random.PRNGKey(0)
    ks = jax.random.split(key, 9)
    x = jax.random.normal(ks[0], (N, Cin, L), jnp.float32)
    params = dict(
        w1=0.3 * jax.random.normal(ks[1], (Cout, Cin, 3), jnp.float32),
        b1=0.1 * jax.random.normal(ks[2], (Cout, 1), jnp.float32),
        g1=1.0 + 0.1 * jax.random.normal(ks[3], (Cout, 1), jnp.float32),
        be1=0.1 * jax.random.normal(ks[4], (Cout, 1), jnp.float32),
        w2=0.3 * jax.random.normal(ks[5], (Cout, Cout, 3), jnp.float32),
        b2=0.1 * jax.random.normal(ks[6], (Cout, 1), jnp.float32),
        g2=1.0 + 0.1 * jax.random.normal(ks[7], (Cout, 1), jnp.float32),
        be2=0.1 * jax.random.normal(ks[8], (Cout, 1), jnp.float32),
    )

    out = jax.block_until_ready(double_conv(x, params))
    assert out.shape == (N, Cout, L)

    ref = jax.block_until_ready(ref_forward(x, params))
    np.testing.assert_allclose(np.asarray(out), np.asarray(ref), atol=2e-3, rtol=2e-3)
    print("KERNEL_OK")
</pallas_src>

<mosaic_0001>
module attributes {stable_mosaic.version = 11 : i64} {
  func.func @double_conv_kernel(%arg0: memref<4x32xf32, #tpu.memory_space<vmem>>, %arg1: memref<8x12xf32, #tpu.memory_space<vmem>>, %arg2: memref<8x24xf32, #tpu.memory_space<vmem>>, %arg3: memref<4x8x1xf32, #tpu.memory_space<vmem>>, %arg4: memref<8x32xf32, #tpu.memory_space<vmem>>) attributes {dimension_semantics = [], scalar_prefetch = 0 : i64, scratch_operands = 0 : i64, tpu.core_type = #tpu.core_type<tc>} {
    %c0 = arith.constant 0 : index
    %c0_0 = arith.constant 0 : index
    %0 = vector.load %arg0[%c0, %c0_0] : memref<4x32xf32, #tpu.memory_space<vmem>>, vector<4x32xf32>
    %1 = tpu.iota {dimensions = array<i32: 1>} : vector<1x32xi32>
    %c16_i32 = arith.constant 16 : i32
    %c0_i32 = arith.constant 0 : i32
    %2 = arith.cmpi eq, %c16_i32, %c0_i32 : i32
    %c1_i32 = arith.constant 1 : i32
    %3 = arith.select %2, %c1_i32, %c16_i32 : i32
    %4 = vector.broadcast %3 : i32 to vector<1x32xi32>
    %5 = arith.remsi %1, %4 : vector<1x32xi32>
    %c0_i32_1 = arith.constant 0 : i32
    %6 = vector.broadcast %c0_i32_1 : i32 to vector<1x32xi32>
    %7 = arith.cmpi ne, %5, %6 : vector<1x32xi32>
    %c0_i32_2 = arith.constant 0 : i32
    %8 = vector.broadcast %c0_i32_2 : i32 to vector<1x32xi32>
    %9 = arith.cmpi slt, %5, %8 : vector<1x32xi32>
    %c0_i32_3 = arith.constant 0 : i32
    %10 = arith.cmpi slt, %3, %c0_i32_3 : i32
    %11 = vector.broadcast %10 : i1 to vector<1x32xi1>
    %12 = vector.broadcast %11 : vector<1x32xi1> to vector<1x32xi1>
    %13 = arith.xori %9, %12 : vector<1x32xi1>
    %14 = arith.andi %13, %7 : vector<1x32xi1>
    %15 = vector.broadcast %3 : i32 to vector<1x32xi32>
    %16 = arith.addi %5, %15 : vector<1x32xi32>
    %17 = arith.select %14, %16, %5 : vector<1x32xi1>, vector<1x32xi32>
    %c0_i32_4 = arith.constant 0 : i32
    %18 = vector.broadcast %c0_i32_4 : i32 to vector<1x32xi32>
    %19 = arith.cmpi ne, %17, %18 : vector<1x32xi32>
    %20 = arith.extui %19 : vector<1x32xi1> to vector<1x32xi32>
    %21 = arith.sitofp %20 : vector<1x32xi32> to vector<1x32xf32>
    %c15_i32 = arith.constant 15 : i32
    %22 = vector.broadcast %c15_i32 : i32 to vector<1x32xi32>
    %23 = arith.cmpi ne, %17, %22 : vector<1x32xi32>
    %24 = arith.extui %23 : vector<1x32xi1> to vector<1x32xi32>
    %25 = arith.sitofp %24 : vector<1x32xi32> to vector<1x32xf32>
    %c0_5 = arith.constant 0 : index
    %c0_6 = arith.constant 0 : index
    %c0_7 = arith.constant 0 : index
    %26 = vector.load %arg3[%c0_5, %c0_6, %c0_7] : memref<4x8x1xf32, #tpu.memory_space<vmem>>, vector<1x8x1xf32>
    %27 = vector.shape_cast %26 : vector<1x8x1xf32> to vector<8x1xf32>
    %c1 = arith.constant 1 : index
    %c0_8 = arith.constant 0 : index
    %c0_9 = arith.constant 0 : index
    %28 = vector.load %arg3[%c1, %c0_8, %c0_9] : memref<4x8x1xf32, #tpu.memory_space<vmem>>, vector<1x8x1xf32>
    %29 = vector.shape_cast %28 : vector<1x8x1xf32> to vector<8x1xf32>
    %c2 = arith.constant 2 : index
    %c0_10 = arith.constant 0 : index
    %c0_11 = arith.constant 0 : index
    %30 = vector.load %arg3[%c2, %c0_10, %c0_11] : memref<4x8x1xf32, #tpu.memory_space<vmem>>, vector<1x8x1xf32>
    %31 = vector.shape_cast %30 : vector<1x8x1xf32> to vector<8x1xf32>
    %c3 = arith.constant 3 : index
    %c0_12 = arith.constant 0 : index
    %c0_13 = arith.constant 0 : index
    %32 = vector.load %arg3[%c3, %c0_12, %c0_13] : memref<4x8x1xf32, #tpu.memory_space<vmem>>, vector<1x8x1xf32>
    %33 = vector.shape_cast %32 : vector<1x8x1xf32> to vector<8x1xf32>
    %c0_14 = arith.constant 0 : index
    %c0_15 = arith.constant 0 : index
    %34 = vector.load %arg1[%c0_14, %c0_15] : memref<8x12xf32, #tpu.memory_space<vmem>>, vector<8x12xf32>
    %cst = arith.constant 0.000000e+00 : f32
    %35 = vector.broadcast %cst : f32 to vector<4x1xf32>
    %36 = tpu.concatenate %35, %0, %35 in 1 : vector<4x1xf32>, vector<4x32xf32>, vector<4x1xf32> -> vector<4x34xf32>
    %37 = vector.extract_strided_slice %36 {offsets = [0, 0], sizes = [4, 32], strides = [1, 1]} : vector<4x34xf32> to vector<4x32xf32>
    %38 = vector.broadcast %21 : vector<1x32xf32> to vector<4x32xf32>
    %39 = arith.mulf %37, %38 : vector<4x32xf32>
    %40 = vector.extract_strided_slice %36 {offsets = [0, 2], sizes = [4, 32], strides = [1, 1]} : vector<4x34xf32> to vector<4x32xf32>
    %41 = vector.broadcast %25 : vector<1x32xf32> to vector<4x32xf32>
    %42 = arith.mulf %40, %41 : vector<4x32xf32>
    %43 = tpu.concatenate %39, %0, %42 in 0 : vector<4x32xf32>, vector<4x32xf32>, vector<4x32xf32> -> vector<12x32xf32>
    %cst_16 = arith.constant dense<0.000000e+00> : vector<8x32xf32>
    %44 = tpu.matmul %34, %43, %cst_16 {dimension_numbers = #tpu.dot_dimension_numbers<[1], [0], [0], [1], [0, 0, 1, 1], [], []>} : vector<8x12xf32>, vector<12x32xf32>, vector<8x32xf32> -> vector<8x32xf32>
    %cst_17 = arith.constant dense<0.000000e+00> : vector<8xf32>
    %45 = vector.multi_reduction <add>, %44, %cst_17 [1] : vector<8x32xf32> to vector<8xf32>
    %46 = vector.shape_cast %45 : vector<8xf32> to vector<8x1xf32>
    %47 = arith.mulf %44, %44 : vector<8x32xf32>
    %cst_18 = arith.constant dense<0.000000e+00> : vector<8xf32>
    %48 = vector.multi_reduction <add>, %47, %cst_18 [1] : vector<8x32xf32> to vector<8xf32>
    %49 = vector.shape_cast %48 : vector<8xf32> to vector<8x1xf32>
    %cst_19 = arith.constant 3.125000e-02 : f32
    %50 = vector.broadcast %cst_19 : f32 to vector<8x1xf32>
    %51 = arith.mulf %46, %50 : vector<8x1xf32>
    %cst_20 = arith.constant 3.125000e-02 : f32
    %52 = vector.broadcast %cst_20 : f32 to vector<8x1xf32>
    %53 = arith.mulf %49, %52 : vector<8x1xf32>
    %54 = arith.mulf %51, %51 : vector<8x1xf32>
    %55 = arith.subf %53, %54 : vector<8x1xf32>
    %cst_21 = arith.constant 9.99999974E-6 : f32
    %56 = vector.broadcast %cst_21 : f32 to vector<8x1xf32>
    %57 = arith.addf %55, %56 : vector<8x1xf32>
    %58 = math.rsqrt %57 : vector<8x1xf32>
    %59 = arith.mulf %27, %58 : vector<8x1xf32>
    %60 = arith.mulf %51, %59 : vector<8x1xf32>
    %61 = arith.subf %29, %60 : vector<8x1xf32>
    %62 = vector.broadcast %59 : vector<8x1xf32> to vector<8x32xf32>
    %63 = arith.mulf %44, %62 : vector<8x32xf32>
    %64 = vector.broadcast %61 : vector<8x1xf32> to vector<8x32xf32>
    %65 = arith.addf %63, %64 : vector<8x32xf32>
    %cst_22 = arith.constant 0.000000e+00 : f32
    %66 = vector.broadcast %cst_22 : f32 to vector<8x32xf32>
    %67 = arith.maximumf %65, %66 : vector<8x32xf32>
    %c0_23 = arith.constant 0 : index
    %c0_24 = arith.constant 0 : index
    %68 = vector.load %arg2[%c0_23, %c0_24] : memref<8x24xf32, #tpu.memory_space<vmem>>, vector<8x24xf32>
    %cst_25 = arith.constant 0.000000e+00 : f32
    %69 = vector.broadcast %cst_25 : f32 to vector<8x1xf32>
    %70 = tpu.concatenate %69, %67, %69 in 1 : vector<8x1xf32>, vector<8x32xf32>, vector<8x1xf32> -> vector<8x34xf32>
    %71 = vector.extract_strided_slice %70 {offsets = [0, 0], sizes = [8, 32], strides = [1, 1]} : vector<8x34xf32> to vector<8x32xf32>
    %72 = vector.broadcast %21 : vector<1x32xf32> to vector<8x32xf32>
    %73 = arith.mulf %71, %72 : vector<8x32xf32>
    %74 = vector.extract_strided_slice %70 {offsets = [0, 2], sizes = [8, 32], strides = [1, 1]} : vector<8x34xf32> to vector<8x32xf32>
    %75 = vector.broadcast %25 : vector<1x32xf32> to vector<8x32xf32>
    %76 = arith.mulf %74, %75 : vector<8x32xf32>
    %77 = tpu.concatenate %73, %67, %76 in 0 : vector<8x32xf32>, vector<8x32xf32>, vector<8x32xf32> -> vector<24x32xf32>
    %cst_26 = arith.constant dense<0.000000e+00> : vector<8x32xf32>
    %78 = tpu.matmul %68, %77, %cst_26 {dimension_numbers = #tpu.dot_dimension_numbers<[1], [0], [0], [1], [0, 0, 1, 1], [], []>} : vector<8x24xf32>, vector<24x32xf32>, vector<8x32xf32> -> vector<8x32xf32>
    %cst_27 = arith.constant dense<0.000000e+00> : vector<8xf32>
    %79 = vector.multi_reduction <add>, %78, %cst_27 [1] : vector<8x32xf32> to vector<8xf32>
    %80 = vector.shape_cast %79 : vector<8xf32> to vector<8x1xf32>
    %81 = arith.mulf %78, %78 : vector<8x32xf32>
    %cst_28 = arith.constant dense<0.000000e+00> : vector<8xf32>
    %82 = vector.multi_reduction <add>, %81, %cst_28 [1] : vector<8x32xf32> to vector<8xf32>
    %83 = vector.shape_cast %82 : vector<8xf32> to vector<8x1xf32>
    %cst_29 = arith.constant 3.125000e-02 : f32
    %84 = vector.broadcast %cst_29 : f32 to vector<8x1xf32>
    %85 = arith.mulf %80, %84 : vector<8x1xf32>
    %cst_30 = arith.constant 3.125000e-02 : f32
    %86 = vector.broadcast %cst_30 : f32 to vector<8x1xf32>
    %87 = arith.mulf %83, %86 : vector<8x1xf32>
    %88 = arith.mulf %85, %85 : vector<8x1xf32>
    %89 = arith.subf %87, %88 : vector<8x1xf32>
    %cst_31 = arith.constant 9.99999974E-6 : f32
    %90 = vector.broadcast %cst_31 : f32 to vector<8x1xf32>
    %91 = arith.addf %89, %90 : vector<8x1xf32>
    %92 = math.rsqrt %91 : vector<8x1xf32>
    %93 = arith.mulf %31, %92 : vector<8x1xf32>
    %94 = arith.mulf %85, %93 : vector<8x1xf32>
    %95 = arith.subf %33, %94 : vector<8x1xf32>
    %96 = vector.broadcast %93 : vector<8x1xf32> to vector<8x32xf32>
    %97 = arith.mulf %78, %96 : vector<8x32xf32>
    %98 = vector.broadcast %95 : vector<8x1xf32> to vector<8x32xf32>
    %99 = arith.addf %97, %98 : vector<8x32xf32>
    %cst_32 = arith.constant 0.000000e+00 : f32
    %100 = vector.broadcast %cst_32 : f32 to vector<8x32xf32>
    %101 = arith.maximumf %99, %100 : vector<8x32xf32>
    %c0_33 = arith.constant 0 : index
    %c0_34 = arith.constant 0 : index
    %102 = vector.load %arg4[%c0_33, %c0_34] : memref<8x32xf32, #tpu.memory_space<vmem>>, vector<8x32xf32>
    tpu.vector_store %arg4[%c0_33, %c0_34], %101 {strides = array<i32>} : memref<8x32xf32, #tpu.memory_space<vmem>>, vector<8x32xf32>,
    return
  }
}

</mosaic_0001>

<bundles_post_ra>
// kernel: tpu_custom_call.1
= control target key start
LH: loop header
LB: loop body
LE: loop exit
PB: predicated region body
PF: predicated region fallthrough
CT: control target
= control target key end

     0   :  { %v19_v1 = vlaneseq  ;;  %s272_s17 = smov 1   ;;  %s344_s0 = inlined_call_operand.vmem [shape: f32[4,32], index: 0, kind: input, shape index: {}]   ;;  %s345_s1 = inlined_call_operand.vmem [shape: f32[8,12], index: 1, kind: input, shape index: {}]   ;;  %s346_s2 = inlined_call_operand.vmem [shape: f32[8,24], index: 2, kind: input, shape index: {}]   ;;  %s347_s3 = inlined_call_operand.vmem [shape: f32[4,8,1], index: 3, kind: input, shape index: {}]   ;;  %s348_s4 = inlined_call_operand.hbm [shape: f32[8,32], index: 4, kind: output, shape index: {}]  }
   0x1   :  { %v18_v0 = vld [vmem:[%s344_s0] sm:$0xf] }
   0x2   :  { %48 = vrot.lane.b32.xlu0 %v18_v0, %s272_s17 }
   0x3   :  { %9 = vsyncpa [#allocation3], 0  ;;  %v20_v2 = vand.u32 127, %v19_v1  ;;  %v273_v4 = vmov 0.0   ;;  %s274_s18 = smov 2   ;;  %vm51_vm2 = vcmask 7168  }
   0x4   :  { %vm53_vm3 = vcmask 269312   ;;  %v61_v8 = vrot.slane %v18_v0, 4  ;;  %vm66_vm4 = vcmask 1043456   ;;  %s275_s0 = smov 126   ;;  %v46_v16 = vld [vmem:[%s345_s1] sm:$0xff]  ;;  %vm68_vm5 = vcmask 97280  }
   0x5   :  { %v25_v3 = vand.u32 15, %v20_v2  ;;  %vm94_vm6 = vcmask 261120   ;;  %v276_v21 = vmov 0   ;;  %v39_v34 = vld [vmem:[%s347_s3] sm:$0xff]  ;;  %v227_v38 = vld [vmem:[%s347_s3 + $0x8] sm:$0xff]  ;;  %vm146_vm10 = vcmask 195584  }
   0x6   :  { %239 = vset.pattern.permute.xlu2 %v276_v21  ;;  %240 = vset.pattern.permute.xlu0 %v276_v21  ;;  %v133_v52 = vld [vmem:[%s346_s2] sm:$0xff]  ;;  %s277_s29 = smov [#allocation2]   ;;  %s216_s7 = sshll.u32 %s348_s4, 4  ;;  %s217_s7 = int_to_ptr.hbm [resolvable:$true] %s216_s7 }
   0x7   :  { %vm36_vm0 = vcmp.ne.s32.totalorder %v25_v3, 15  ;;  %vm33_vm1 = vcmp.ne.s32.totalorder %v25_v3, 0  ;;  %241 = vset.pattern.permute.xlu1 %v276_v21  ;;  %s214_s30 = sshll.u32 %s277_s29, 4  ;;  %s215_s30 = int_to_ptr.vmem [resolvable:$true] %s214_s30 }
   0x8   :  { %v226_v5 = vsel %vm36_vm0, 1.0, %v273_v4  ;;  %v307_v6 = vsel %vm33_vm1, 1.0, %v273_v4 }
   0xa   :  { %57 = vrot.lane.b32.xlu0 %v226_v5, %s274_s18  ;;  %v228_v5 = vld [vmem:[%s347_s3 + $0x10] sm:$0xff] }
  0x74   :  { %v49_v7 = vpop.permute.xlu0 %48 }
  0x75   :  { %v52_v9 = vsel %vm51_vm2, 0.0, %v49_v7 }
  0x76   :  { %v54_v10 = vsel %vm53_vm3, %v52_v9, 0.0 }
  0x77   :  { %v55_v11 = vmul.f32 %v307_v6, %v54_v10 }
  0x79   :  { %v67_v12 = vsel %vm66_vm4, %v55_v11, %v61_v8 }
  0x7c   :  { %v58_v13 = vpop.permute.xlu0 %57 }
  0x7d   :  { %v60_v14 = vmul.f32 %v58_v13, %v54_v10  ;;  %v229_v10 = vld [vmem:[%s347_s3 + $0x18] sm:$0xff] }
  0x7f   :  { %64 = vrot.lane.b32.xlu1 %v60_v14, %s275_s0 }
  0xf1   :  { %v65_v15 = vpop.permute.xlu1 %64 }
  0xf2   :  { %230 = vmatpush.msk.msra.mxu0 %vm66_vm4, %v65_v15 }
  0xf4   :  { %89 = vmatpush.msra.mxu0 %v67_v12 }
  0xf5   :  { %231 = vmatmul.msk.f32.vlgmr.msra.gmra.mxu0 %vm68_vm5, %v46_v16 }
 0x172   :  { %v91_v17 = vpop.f32.mrf.mxu0 }
 0x173   :  { %v95_v18 = vsel %vm94_vm6, %v91_v17, 0.0  ;;  %v98_v19 = vmul.f32 %v91_v17, %v91_v17 }
 0x174   :  { %96 = vadd.xlane.f32.xlu1 %v95_v18 }
 0x175   :  { %v99_v20 = vsel %vm94_vm6, %v98_v19, 0.0 }
 0x176   :  { %100 = vadd.xlane.f32.xlu2 %v99_v20 }
 0x1e7   :  { %v97_v22 = vpop.xlane.xlu1 %96 }
 0x1e8   :  { %v102_v23 = vmul.f32 0.03125, %v97_v22 }
 0x1e9   :  { %v101_v24 = vpop.xlane.xlu2 %100 }
 0x1ea   :  { %v104_v25 = vmul.f32 %v102_v23, %v102_v23  ;;  %v103_v26 = vmul.f32 0.03125, %v101_v24 }
 0x1ec   :  { %v105_v27 = vsub.f32 %v103_v26, %v104_v25 }
 0x1ee   :  { %v106_v28 = vadd.f32 1e-05, %v105_v27 }
 0x1f0   :  { %242 = vrsqrt.f32 %v106_v28  ;;  %vm113_vm8 = vweird.f32 %v106_v28 }
 0x1f6   :  { %v243_v29 = vpop.eup %242 }
 0x1f7   :  { %v108_v30 = vmul.f32 %v243_v29, %v106_v28  ;;  %vm114_vm7 = vweird.f32 %v243_v29 }
 0x1f8   :  { %vm115_vm9 = vmor %vm113_vm8, %vm114_vm7 }
 0x1f9   :  { %v109_v31 = vmul.f32 %v243_v29, %v108_v30 }
 0x1fb   :  { %v110_v32 = vmul.f32 0.5, %v109_v31 }
 0x1fd   :  { %v111_v33 = vsub.f32 1.5, %v110_v32 }
 0x1ff   :  { %v112_v35 = vmul.f32 %v243_v29, %v111_v33 }
 0x201   :  { %v116_v36 = vsel %vm115_vm9, %v243_v29, %v112_v35 }
 0x202   :  { %v117_v37 = vmul.f32 %v116_v36, %v39_v34 }
 0x204   :  { %122 = vperm.xlu2 %239, %v117_v37   ;;  %v118_v39 = vmul.f32 %v117_v37, %v102_v23 }
 0x206   :  { %v119_v40 = vsub.f32 %v227_v38, %v118_v39 }
 0x208   :  { %128 = vperm.xlu0 %240, %v119_v40  }
 0x25e   :  { %v123_v41 = vpop.permute.xlu2 %122 }
 0x25f   :  { %v125_v42 = vmul.f32 %v123_v41, %v91_v17 }
 0x27a   :  { %v129_v43 = vpop.permute.xlu0 %128 }
 0x27b   :  { %v131_v44 = vadd.f32 %v129_v43, %v125_v42 }
 0x27d   :  { %v132_v45 = vmax.f32 %v131_v44, 0.0 }
 0x27f   :  { %135 = vrot.lane.b32.xlu0 %v132_v45, %s272_s17 }
 0x2f1   :  { %v136_v46 = vpop.permute.xlu0 %135 }
 0x2f2   :  { %v138_v47 = vsel %vm51_vm2, 0.0, %v136_v46 }
 0x2f3   :  { %v139_v48 = vsel %vm53_vm3, %v138_v47, 0.0 }
 0x2f4   :  { %v141_v49 = vmul.f32 %v139_v48, %v58_v13  ;;  %v140_v51 = vmul.f32 %v307_v6, %v139_v48 }
 0x2f6   :  { %143 = vrot.lane.b32.xlu2 %v141_v49, %s275_s0 }
 0x350   :  { %v144_v50 = vpop.permute.xlu2 %143 }
 0x351   :  { %163 = vmatpush.msra.mxu1 %v144_v50 }
 0x353   :  { %164 = vmatpush.msra.mxu1 %v132_v45 }
 0x355   :  { %165 = vmatpush.msra.mxu1 %v140_v51 }
 0x356   :  { %232 = vmatmul.msk.f32.vlgmr.msra.gmra.mxu1 %vm146_vm10, %v133_v52 }
 0x3d3   :  { %v167_v53 = vpop.f32.mrf.mxu1 }
 0x3d4   :  { %v173_v54 = vmul.f32 %v167_v53, %v167_v53  ;;  %v170_v55 = vsel %vm94_vm6, %v167_v53, 0.0 }
 0x3d5   :  { %171 = vadd.xlane.f32.xlu0 %v170_v55 }
 0x3d6   :  { %v174_v56 = vsel %vm94_vm6, %v173_v54, 0.0 }
 0x3d7   :  { %175 = vadd.xlane.f32.xlu2 %v174_v56 }
 0x448   :  { %v172_v57 = vpop.xlane.xlu0 %171 }
 0x449   :  { %v177_v58 = vmul.f32 0.03125, %v172_v57 }
 0x44a   :  { %v176_v59 = vpop.xlane.xlu2 %175 }
 0x44b   :  { %v179_v60 = vmul.f32 %v177_v58, %v177_v58  ;;  %v178_v61 = vmul.f32 0.03125, %v176_v59 }
 0x44d   :  { %v180_v62 = vsub.f32 %v178_v61, %v179_v60 }
 0x44f   :  { %v181_v63 = vadd.f32 1e-05, %v180_v62 }
 0x451   :  { %244 = vrsqrt.f32 %v181_v63  ;;  %vm188_vm12 = vweird.f32 %v181_v63 }
 0x457   :  { %v245_v0 = vpop.eup %244 }
 0x458   :  { %v183_v1 = vmul.f32 %v245_v0, %v181_v63  ;;  %vm189_vm11 = vweird.f32 %v245_v0 }
 0x459   :  { %vm190_vm13 = vmor %vm188_vm12, %vm189_vm11 }
 0x45a   :  { %v184_v2 = vmul.f32 %v245_v0, %v183_v1 }
 0x45c   :  { %v185_v3 = vmul.f32 0.5, %v184_v2 }
 0x45e   :  { %v186_v4 = vsub.f32 1.5, %v185_v3 }
 0x460   :  { %v187_v6 = vmul.f32 %v245_v0, %v186_v4 }
 0x462   :  { %v191_v7 = vsel %vm190_vm13, %v245_v0, %v187_v6 }
 0x463   :  { %v192_v8 = vmul.f32 %v228_v5, %v191_v7 }
 0x465   :  { %197 = vperm.xlu1 %241, %v192_v8   ;;  %v193_v9 = vmul.f32 %v192_v8, %v177_v58 }
 0x467   :  { %v194_v11 = vsub.f32 %v229_v10, %v193_v9 }
 0x46d   :  { %203 = vperm.xlu1 %241, %v194_v11  }
 0x4d7   :  { %v198_v12 = vpop.permute.xlu1 %197 }
 0x4d8   :  { %v200_v13 = vmul.f32 %v198_v12, %v167_v53 }
 0x4df   :  { %v204_v14 = vpop.permute.xlu1 %203 }
 0x4e0   :  { %v206_v15 = vadd.f32 %v204_v14, %v200_v13 }
 0x4e2   :  { %v207_v16 = vmax.f32 %v206_v15, 0.0 }
 0x4e4   :  { %208 = vst.msk [vmem:[#allocation2] sm:$0xff] %vm94_vm6, %v207_v16 }
 0x4e5   :  { %219 = dma.vmem_to_hbm [thread:$0]  %s215_s30, 128, %s217_s7, [#allocation3]  }
 0x4e6   :  { %270 = dma.done.wait [#allocation3], 128  }
 0x4e7   :  { %271 = vsyncadd [#allocation3], 4294967168 }
 0x4e8   :  { %224 = vsyncpa [#allocation3], 1 }

</bundles_post_ra>
